<compile_context>
chip_gen: v7x
topology: tpu7x:2x2x1
jax: 0.10.0
libtpu: 0.0.40
codegen_flags: <defaults>
</compile_context>

<pallas_src>
import functools

import jax
import jax.numpy as jnp
from jax.experimental import pallas as pl
from jax.experimental.pallas import tpu as pltpu

_LANE = 128
_PAD_UNIT = 8 * _LANE  # 1024: one full (8, 128) f32 vreg worth of elements


def _garf_kernel(x_ref, o_ref, *, neg_inv_two_sigmasq, compute_f32):
    x = x_ref[...]
    if compute_f32 and x.dtype != jnp.float32:
        x = x.astype(jnp.float32)
    # x*x and scale on the VPU, exp on the EUP; negation folded into constant.
    y = jnp.exp((x * x) * neg_inv_two_sigmasq)
    o_ref[...] = y.astype(o_ref.dtype)


def _plan_slab(n):
    """Return (n_padded, K): lane-dense slab width K (multiple of 128)."""
    for k in (4096, 2048, 1024, 512, 384, 256, 128):
        if n % k == 0:
            return n, k
    # Awkward size: pad to a multiple of 1024 so (8,128)-aligned tiles and
    # unmasked lane-dense stores are restored for any n.
    n_pad = ((n + _PAD_UNIT - 1) // _PAD_UNIT) * _PAD_UNIT
    for k in (4096, 2048, 1024):
        if n_pad % k == 0:
            return n_pad, k
    return n_pad, 1024  # unreachable: n_pad is a multiple of 1024


def _pick_row_tile(M, K, itemsize, sublane, target_block_bytes):
    """Row tile ~target_block_bytes, sublane-aligned, preferring a divisor of
    M with an even block count (keeps both v7x TensorCores busy)."""
    if M <= sublane:
        return M  # single full-extent block (always legal)
    target_rows = max(
        sublane, (target_block_bytes // (K * itemsize)) // sublane * sublane
    )
    if M % sublane != 0:
        # Ragged row count: sublane-aligned tile, Pallas masks the last block.
        return min(target_rows, (M // sublane) * sublane)
    # Sublane-aligned divisors of M, capped at target_rows.
    cap = min(target_rows, M)
    cands = [d for d in range(sublane, cap + 1, sublane) if M % d == 0]
    if not cands:
        return cap
    even = [d for d in cands if (M // d) % 2 == 0]
    pool = even if even else cands
    return max(pool)  # largest tile in the preferred pool: fewest grid steps


def my_garf(x, sigma=1.0, *, target_block_bytes=4 << 20):
    """Pallas implementation of MyGARF.forward for arbitrary-shaped input."""
    sigma = float(sigma)
    if sigma == 0.0:
        raise ValueError("sigma must be non-zero")
    orig_shape = x.shape
    n = int(x.size)
    if n == 0:
        return x
    dtype = x.dtype
    itemsize = jnp.dtype(dtype).itemsize
    neg_inv_two_sigmasq = -1.0 / (2.0 * sigma * sigma)

    n_pad, K = _plan_slab(n)
    x_flat = x.reshape(-1)            # bitcast for default (contiguous) layout
    if n_pad != n:
        x_flat = jnp.pad(x_flat, (0, n_pad - n))
    M = n_pad // K
    x2d = x_flat.reshape(M, K)

    # dtype-aware sublane minimum: f32 -> 8, bf16/f16 -> 16, int8/fp8 -> 32.
    sublane = {1: 32, 2: 16}.get(itemsize, 8)
    tm = _pick_row_tile(M, K, itemsize, sublane, target_block_bytes)
    grid = (pl.cdiv(M, tm),)

    kernel = functools.partial(
        _garf_kernel,
        neg_inv_two_sigmasq=neg_inv_two_sigmasq,
        compute_f32=(dtype != jnp.float32),
    )

    out2d = pl.pallas_call(
        kernel,
        out_shape=jax.ShapeDtypeStruct((M, K), dtype),
        grid=grid,
        in_specs=[pl.BlockSpec((tm, K), lambda i: (i, 0))],
        out_specs=pl.BlockSpec((tm, K), lambda i: (i, 0)),
        compiler_params=pltpu.CompilerParams(
            dimension_semantics=("parallel",),
            vmem_limit_bytes=32 << 20,   # headroom on v5e; default on v6e/v7x
        ),
    )(x2d)

    out_flat = out2d.reshape(-1)
    if n_pad != n:
        out_flat = out_flat[:n]
    return out_flat.reshape(orig_shape)


if __name__ == "__main__":
    key = jax.random.PRNGKey(0)
    sigma = 1.0

    # Small NCHW input consistent with the module's (shape-agnostic) usage.
    x = jax.random.normal(key, (2, 4, 16, 16), dtype=jnp.float32)
    out = jax.block_until_ready(my_garf(x, sigma=sigma))
    ref = jnp.exp(-x ** 2 / 2.0 / (sigma ** 2))
    assert out.shape == x.shape and out.dtype == x.dtype
    assert jnp.allclose(out, ref, atol=1e-6, rtol=1e-6)

    # Awkward (non-multiple-of-128) size: exercises the pad/slice path.
    k2, k3 = jax.random.split(key)
    x_odd = jax.random.normal(k2, (3, 5, 7), dtype=jnp.float32)
    out_odd = jax.block_until_ready(my_garf(x_odd, sigma=sigma))
    ref_odd = jnp.exp(-x_odd ** 2 / 2.0 / (sigma ** 2))
    assert out_odd.shape == x_odd.shape
    assert jnp.allclose(out_odd, ref_odd, atol=1e-6, rtol=1e-6)

    # bf16 input: kernel computes in f32 and casts back on store.
    x_bf = jax.random.normal(k3, (2, 4, 16, 16), dtype=jnp.bfloat16)
    out_bf = jax.block_until_ready(my_garf(x_bf, sigma=sigma))
    ref_bf = jnp.exp(
        -x_bf.astype(jnp.float32) ** 2 / 2.0 / (sigma ** 2)
    ).astype(jnp.bfloat16)
    assert out_bf.dtype == jnp.bfloat16
    assert jnp.allclose(
        out_bf.astype(jnp.float32), ref_bf.astype(jnp.float32), atol=1e-2
    )

    print("KERNEL_OK")
</pallas_src>

<mosaic_0001>
module attributes {stable_mosaic.version = 11 : i64} {
  func.func @_garf_kernel(%arg0: i32, %arg1: memref<1x2048xf32, #tpu.memory_space<vmem>>, %arg2: memref<1x2048xf32, #tpu.memory_space<vmem>>) attributes {dimension_semantics = [#tpu.dimension_semantics<parallel>], iteration_bounds = array<i64: 1>, scalar_prefetch = 0 : i64, scratch_operands = 0 : i64, tpu.core_type = #tpu.core_type<tc>, window_params = [{transform_indices = @transform_0, window_bounds = array<i64: 1, 2048>}, {transform_indices = @transform_1, window_bounds = array<i64: 1, 2048>}]} {
    %c0 = arith.constant 0 : index
    %c0_0 = arith.constant 0 : index
    %0 = vector.load %arg1[%c0, %c0_0] : memref<1x2048xf32, #tpu.memory_space<vmem>>, vector<1x2048xf32>
    %1 = arith.mulf %0, %0 : vector<1x2048xf32>
    %cst = arith.constant -5.000000e-01 : f32
    %2 = vector.broadcast %cst : f32 to vector<1x2048xf32>
    %3 = arith.mulf %1, %2 : vector<1x2048xf32>
    %4 = math.exp %3 : vector<1x2048xf32>
    %c0_1 = arith.constant 0 : index
    %c0_2 = arith.constant 0 : index
    %5 = vector.load %arg2[%c0_1, %c0_2] : memref<1x2048xf32, #tpu.memory_space<vmem>>, vector<1x2048xf32>
    tpu.vector_store %arg2[%c0_1, %c0_2], %4 {strides = array<i32>} : memref<1x2048xf32, #tpu.memory_space<vmem>>, vector<1x2048xf32>,
    return
  }
  func.func @transform_0(%arg0: i32) -> (i32, i32) {
    %c0_i32 = arith.constant 0 : i32
    %c0_i32_0 = arith.constant 0 : i32
    return %arg0, %c0_i32 : i32, i32
  }
  func.func @transform_1(%arg0: i32) -> (i32, i32) {
    %c0_i32 = arith.constant 0 : i32
    %c0_i32_0 = arith.constant 0 : i32
    return %arg0, %c0_i32 : i32, i32
  }
}

</mosaic_0001>

<bundles_post_ra>
// kernel: tpu_custom_call.1
= control target key start
LH: loop header
LB: loop body
LE: loop exit
PB: predicated region body
PF: predicated region fallthrough
CT: control target
= control target key end

     0   :  { %6 = vsyncpa [#allocation3], 0  ;;  %s138_s0 = inlined_call_operand.hbm [shape: f32[1,2048], index: 0, kind: input, shape index: {}]   ;;  %s139_s1 = inlined_call_operand.hbm [shape: f32[1,2048], index: 1, kind: output, shape index: {}]  }
   0x1   :  { %7 = vsyncpa [#allocation4], 0  ;;  %s102_s6 = smov [#allocation2]   ;;  %s54_s10 = scalar_lea.hbm %s138_s0, 256 }
   0x2   :  { %s14_s7 = sshll.u32 %s102_s6, 4  ;;  %p55_p0 = scmp.ne.s32.totalorder %s138_s0, %s54_s10  ;;  %s15_s7 = int_to_ptr.vmem [resolvable:$true] %s14_s7 }
   0x3   :  { %p58_p1 = scmp.lt.u32.totalorder %s54_s10, %s138_s0 }
   0x5   :  { %p60_p2 = pnand %p58_p1, %p55_p0 }
   0x7   :  { %63 = shalt.err (!%p60_p2)
}
   0x8   :  { %s64_s15 = scalar_lea.vmem %s15_s7, 256  ;;  %p69_p4 = scmp.lt.s32.totalorder %s15_s7, %s15_s7 }
   0x9   :  { %p65_p3 = scmp.ne.s32.totalorder %s15_s7, %s64_s15  ;;  %p70_p5 = scmp.lt.s32.totalorder %s64_s15, %s64_s15 }
   0xb   :  { %p71_p6 = por %p70_p5, %p69_p4 }
   0xd   :  { %p72_p7 = pnand %p71_p6, %p65_p3 }
   0xf   :  { %75 = shalt.err (!%p72_p7)
}
  0x10   :  { %17 = dma.hbm_to_vmem [thread:$0]  %s138_s0, 256, %s15_s7, [#allocation3]  }
  0x11   :  { %98 = dma.done.wait [#allocation3], 256  }
  0x12   :  { %99 = vsyncadd [#allocation3], 4294967040  ;;  %v21_v0 = vld [vmem:[#allocation2] sm:$0xff]  ;;  %v22_v1 = vld [vmem:[#allocation2 + $0x8] sm:$0xff]  ;;  %s103_s18 = smov [#allocation5]  }
  0x13   :  { %v23_v2 = vmul.f32 %v21_v0, %v21_v0  ;;  %v24_v3 = vmul.f32 %v22_v1, %v22_v1  ;;  %s39_s19 = sshll.u32 %s103_s18, 4  ;;  %s40_s19 = int_to_ptr.vmem [resolvable:$true] %s39_s19 }
  0x14   :  { %s76_s0 = scalar_lea.vmem %s40_s19, 256  ;;  %p81_p9 = scmp.lt.s32.totalorder %s40_s19, %s40_s19 }
  0x15   :  { %v25_v4 = vmul.f32 -0.5, %v23_v2  ;;  %v26_v5 = vmul.f32 -0.5, %v24_v3  ;;  %p77_p8 = scmp.ne.s32.totalorder %s40_s19, %s76_s0  ;;  %p82_p10 = scmp.lt.s32.totalorder %s76_s0, %s76_s0 }
  0x17   :  { %v27_v6 = vmul.f32 1.442695, %v25_v4  ;;  %v29_v7 = vmul.f32 1.442695, %v26_v5  ;;  %p83_p11 = por %p82_p10, %p81_p9 }
  0x19   :  { %50 = vpow2.f32 %v27_v6  ;;  %p84_p12 = pnand %p83_p11, %p77_p8 }
  0x1a   :  { %52 = vpow2.f32 %v29_v7 }
  0x23   :  { %v51_v8 = vpop.eup %50 }
  0x24   :  { %v53_v9 = vpop.eup %52  ;;  %31 = vst [vmem:[#allocation5] sm:$0xff] %v51_v8 }
  0x25   :  { %32 = vst [vmem:[#allocation5 + $0x8] sm:$0xff] %v53_v9 }
  0x26   :  { %87 = shalt.err (!%p84_p12)
}
  0x27   :  { %s88_s22 = scalar_lea.hbm %s139_s1, 256 }
  0x28   :  { %p89_p13 = scmp.ne.s32.totalorder %s139_s1, %s88_s22  ;;  %p92_p0 = scmp.lt.u32.totalorder %s88_s22, %s139_s1 }
  0x2a   :  { %p94_p1 = pnand %p92_p0, %p89_p13 }
  0x2c   :  { %97 = shalt.err (!%p94_p1)
}
  0x2d   :  { %42 = dma.vmem_to_hbm [thread:$0]  %s40_s19, 256, %s139_s1, [#allocation4]  }
  0x2e   :  { %100 = dma.done.wait [#allocation4], 256  }
  0x2f   :  { %101 = vsyncadd [#allocation4], 4294967040 }
  0x30   :  { %46 = vsyncpa [#allocation3], 1 }
  0x31   :  { %47 = vsyncpa [#allocation4], 1 }

</bundles_post_ra>
